<compile_context>
chip_gen: v7x
topology: tpu7x:2x2x1
jax: 0.10.0
libtpu: 0.0.40
codegen_flags: <defaults>
</compile_context>

<pallas_src>
import functools

import jax
import jax.numpy as jnp
from jax.experimental import pallas as pl
from jax.experimental.pallas import tpu as pltpu


def _round_up(a, b):
    return (a + b - 1) // b * b


def mlp_kernel(x_ref, w1_ref, w2_ref, o_ref, acc_ref):
    # x_ref:  (tile_b, in_p)      bf16
    # w1_ref: (in_p,  tile_h)     bf16
    # w2_ref: (tile_h, out_p)     bf16
    # o_ref:  (tile_b, out_p)     output dtype (f32 here)
    # acc_ref:(tile_b, out_p)     f32 scratch accumulator (resident across k)
    k = pl.program_id(1)

    @pl.when(k == 0)
    def _():
        acc_ref[...] = jnp.zeros_like(acc_ref)

    # Layer 1 chunk on the MXU with f32 accumulate, ReLU in f32.
    h = jnp.dot(x_ref[...], w1_ref[...], preferred_element_type=jnp.float32)
    h = jnp.maximum(h, 0.0)

    # Layer 2 partial product, accumulated in f32 scratch.
    # (bf16 downcast of the intermediate is a deliberate inference choice.)
    acc_ref[...] += jnp.dot(h.astype(jnp.bfloat16), w2_ref[...],
                            preferred_element_type=jnp.float32)

    @pl.when(k == pl.num_programs(1) - 1)
    def _():
        o_ref[...] = jnp.maximum(acc_ref[...], 0.0).astype(o_ref.dtype)


def prepare_weights(w1, w2, *, tile_h=512):
    """One-time weight prep (do NOT call per forward).

    w1: [hidden, in]  (PyTorch Linear layout), w2: [out, hidden].
    Returns bf16, transposed, lane-dense-padded weights and the hidden tile.
    """
    hid_f, in_f = w1.shape
    out_f, hid_f2 = w2.shape
    assert hid_f2 == hid_f

    in_p = _round_up(in_f, 128)
    tile_h = min(tile_h, _round_up(hid_f, 128))   # tile_h is a multiple of 128
    hid_p = _round_up(hid_f, tile_h)
    out_p = _round_up(out_f, 128)

    w1_t = jnp.zeros((in_p, hid_p), jnp.bfloat16)
    w1_t = w1_t.at[:in_f, :hid_f].set(w1.T.astype(jnp.bfloat16))
    w2_t = jnp.zeros((hid_p, out_p), jnp.bfloat16)
    w2_t = w2_t.at[:hid_f, :out_f].set(w2.T.astype(jnp.bfloat16))
    return w1_t, w2_t, tile_h, out_f


@functools.partial(jax.jit, static_argnames=("tile_h", "out_features", "tile_b"))
def mlp_forward(x, w1_t, w2_t, *, tile_h, out_features, tile_b=256):
    """x: [B, in_features] (any float dtype). Weights from prepare_weights."""
    B, in_f = x.shape
    in_p, hid_p = w1_t.shape
    hid_p2, out_p = w2_t.shape
    assert hid_p2 == hid_p and in_f <= in_p and hid_p % tile_h == 0

    # Batch tiling: multiple of 16 (bf16 sublanes); keep >=1 grid step,
    # a few steps at realistic B so the pipeline (and v7x's 2 TCs) have work.
    tile_b = min(tile_b, _round_up(B, 16))
    b_pad = _round_up(B, tile_b)

    x_p = jnp.zeros((b_pad, in_p), jnp.bfloat16)
    x_p = x_p.at[:B, :in_f].set(x.astype(jnp.bfloat16))

    grid = (b_pad // tile_b, hid_p // tile_h)

    flops = 2 * b_pad * in_p * hid_p + 2 * b_pad * hid_p * out_p
    out_itemsize = jnp.dtype(x.dtype).itemsize
    bytes_accessed = (x_p.size * 2 + w1_t.size * 2 + w2_t.size * 2
                      + b_pad * out_p * out_itemsize)

    out = pl.pallas_call(
        mlp_kernel,
        out_shape=jax.ShapeDtypeStruct((b_pad, out_p), x.dtype),
        grid_spec=pltpu.PrefetchScalarGridSpec(
            num_scalar_prefetch=0,
            grid=grid,
            in_specs=[
                pl.BlockSpec((tile_b, in_p), lambda i, k: (i, 0)),
                pl.BlockSpec((in_p, tile_h), lambda i, k: (0, k)),
                pl.BlockSpec((tile_h, out_p), lambda i, k: (k, 0)),
            ],
            out_specs=pl.BlockSpec((tile_b, out_p), lambda i, k: (i, 0)),
            scratch_shapes=[pltpu.VMEM((tile_b, out_p), jnp.float32)],
        ),
        compiler_params=pltpu.CompilerParams(
            dimension_semantics=("parallel", "arbitrary"),
            # Above the 32 MiB scoped default, below v7x's 64 MiB physical VMEM.
            vmem_limit_bytes=48 * 1024 * 1024,
        ),
        cost_estimate=pl.CostEstimate(
            flops=flops, transcendentals=0, bytes_accessed=bytes_accessed),
    )(x_p, w1_t, w2_t)

    # Strip batch / output-feature padding.
    return out[:B, :out_features]


if __name__ == "__main__":
    # Small shapes consistent with the module.
    B, in_features, hidden_features, out_features = 8, 32, 64, 16

    key = jax.random.PRNGKey(0)
    kx, k1, k2 = jax.random.split(key, 3)

    x = jax.random.normal(kx, (B, in_features), dtype=jnp.float32)
    # PyTorch Linear weight layout: [out, in].
    w1 = jax.random.normal(k1, (hidden_features, in_features), dtype=jnp.float32) * 0.1
    w2 = jax.random.normal(k2, (out_features, hidden_features), dtype=jnp.float32) * 0.1

    # One-time weight preparation (transpose + pad + bf16 cast).
    w1_t, w2_t, tile_h, out_f = prepare_weights(w1, w2)

    out = mlp_forward(x, w1_t, w2_t, tile_h=tile_h, out_features=out_f)
    out = jax.block_until_ready(out)

    # Correctness check vs plain-JAX f32 reference of the PyTorch forward
    # (loose tolerance: kernel runs bf16 matmuls with f32 accumulation).
    ref = jnp.maximum(jnp.maximum(x @ w1.T, 0.0) @ w2.T, 0.0)
    assert out.shape == (B, out_features)
    assert out.dtype == x.dtype
    assert jnp.allclose(out, ref, atol=5e-2, rtol=5e-2)

    print("KERNEL_OK")
</pallas_src>

<mosaic_0001>
module attributes {stable_mosaic.version = 11 : i64} {
  func.func @mlp_kernel(%arg0: i32, %arg1: i32, %arg2: memref<16x128xbf16, #tpu.memory_space<vmem>>, %arg3: memref<128x128xbf16, #tpu.memory_space<vmem>>, %arg4: memref<128x128xbf16, #tpu.memory_space<vmem>>, %arg5: memref<16x128xf32, #tpu.memory_space<vmem>>, %arg6: memref<16x128xf32, #tpu.memory_space<vmem>>) attributes {dimension_semantics = [#tpu.dimension_semantics<parallel>, #tpu.dimension_semantics<arbitrary>], iteration_bounds = array<i64: 1, 1>, scalar_prefetch = 0 : i64, scratch_operands = 1 : i64, tpu.core_type = #tpu.core_type<tc>, window_params = [{transform_indices = @transform_0, window_bounds = array<i64: 16, 128>}, {transform_indices = @transform_1, window_bounds = array<i64: 128, 128>}, {transform_indices = @transform_2, window_bounds = array<i64: 128, 128>}, {transform_indices = @transform_3, window_bounds = array<i64: 16, 128>}]} {
    %c0_i32 = arith.constant 0 : i32
    %0 = arith.cmpi eq, %arg1, %c0_i32 : i32
    %1 = arith.extui %0 : i1 to i32
    %c0_i32_0 = arith.constant 0 : i32
    %2 = arith.cmpi ne, %1, %c0_i32_0 : i32
    scf.if %2 {
      %cst_14 = arith.constant 0.000000e+00 : f32
      %17 = vector.broadcast %cst_14 : f32 to vector<16x128xf32>
      %c0_15 = arith.constant 0 : index
      %c0_16 = arith.constant 0 : index
      %18 = vector.load %arg6[%c0_15, %c0_16] : memref<16x128xf32, #tpu.memory_space<vmem>>, vector<16x128xf32>
      tpu.vector_store %arg6[%c0_15, %c0_16], %17 {strides = array<i32>} : memref<16x128xf32, #tpu.memory_space<vmem>>, vector<16x128xf32>,
    } else {
    }
    %c0 = arith.constant 0 : index
    %c0_1 = arith.constant 0 : index
    %3 = vector.load %arg2[%c0, %c0_1] : memref<16x128xbf16, #tpu.memory_space<vmem>>, vector<16x128xbf16>
    %c0_2 = arith.constant 0 : index
    %c0_3 = arith.constant 0 : index
    %4 = vector.load %arg3[%c0_2, %c0_3] : memref<128x128xbf16, #tpu.memory_space<vmem>>, vector<128x128xbf16>
    %cst = arith.constant dense<0.000000e+00> : vector<16x128xf32>
    %5 = tpu.matmul %3, %4, %cst {dimension_numbers = #tpu.dot_dimension_numbers<[1], [0], [0], [1], [0, 0, 1, 1], [], []>} : vector<16x128xbf16>, vector<128x128xbf16>, vector<16x128xf32> -> vector<16x128xf32>
    %cst_4 = arith.constant 0.000000e+00 : f32
    %6 = vector.broadcast %cst_4 : f32 to vector<16x128xf32>
    %7 = arith.maximumf %5, %6 : vector<16x128xf32>
    %c0_5 = arith.constant 0 : index
    %c0_6 = arith.constant 0 : index
    %8 = vector.load %arg6[%c0_5, %c0_6] : memref<16x128xf32, #tpu.memory_space<vmem>>, vector<16x128xf32>
    %9 = arith.truncf %7 : vector<16x128xf32> to vector<16x128xbf16>
    %c0_7 = arith.constant 0 : index
    %c0_8 = arith.constant 0 : index
    %10 = vector.load %arg4[%c0_7, %c0_8] : memref<128x128xbf16, #tpu.memory_space<vmem>>, vector<128x128xbf16>
    %cst_9 = arith.constant dense<0.000000e+00> : vector<16x128xf32>
    %11 = tpu.matmul %9, %10, %cst_9 {dimension_numbers = #tpu.dot_dimension_numbers<[1], [0], [0], [1], [0, 0, 1, 1], [], []>} : vector<16x128xbf16>, vector<128x128xbf16>, vector<16x128xf32> -> vector<16x128xf32>
    %12 = arith.addf %8, %11 : vector<16x128xf32>
    %c0_10 = arith.constant 0 : index
    %c0_11 = arith.constant 0 : index
    %13 = vector.load %arg6[%c0_10, %c0_11] : memref<16x128xf32, #tpu.memory_space<vmem>>, vector<16x128xf32>
    tpu.vector_store %arg6[%c0_10, %c0_11], %12 {strides = array<i32>} : memref<16x128xf32, #tpu.memory_space<vmem>>, vector<16x128xf32>,
    %c0_i32_12 = arith.constant 0 : i32
    %14 = arith.cmpi eq, %arg1, %c0_i32_12 : i32
    %15 = arith.extui %14 : i1 to i32
    %c0_i32_13 = arith.constant 0 : i32
    %16 = arith.cmpi ne, %15, %c0_i32_13 : i32
    scf.if %16 {
      %c0_14 = arith.constant 0 : index
      %c0_15 = arith.constant 0 : index
      %17 = vector.load %arg6[%c0_14, %c0_15] : memref<16x128xf32, #tpu.memory_space<vmem>>, vector<16x128xf32>
      %cst_16 = arith.constant 0.000000e+00 : f32
      %18 = vector.broadcast %cst_16 : f32 to vector<16x128xf32>
      %19 = arith.maximumf %17, %18 : vector<16x128xf32>
      %c0_17 = arith.constant 0 : index
      %c0_18 = arith.constant 0 : index
      %20 = vector.load %arg5[%c0_17, %c0_18] : memref<16x128xf32, #tpu.memory_space<vmem>>, vector<16x128xf32>
      tpu.vector_store %arg5[%c0_17, %c0_18], %19 {strides = array<i32>} : memref<16x128xf32, #tpu.memory_space<vmem>>, vector<16x128xf32>,
    } else {
    }
    return
  }
  func.func @transform_0(%arg0: i32, %arg1: i32) -> (i32, i32) {
    %c0_i32 = arith.constant 0 : i32
    %c0_i32_0 = arith.constant 0 : i32
    return %arg0, %c0_i32 : i32, i32
  }
  func.func @transform_1(%arg0: i32, %arg1: i32) -> (i32, i32) {
    %c0_i32 = arith.constant 0 : i32
    %c0_i32_0 = arith.constant 0 : i32
    return %c0_i32, %arg1 : i32, i32
  }
  func.func @transform_2(%arg0: i32, %arg1: i32) -> (i32, i32) {
    %c0_i32 = arith.constant 0 : i32
    %c0_i32_0 = arith.constant 0 : i32
    return %arg1, %c0_i32 : i32, i32
  }
  func.func @transform_3(%arg0: i32, %arg1: i32) -> (i32, i32) {
    %c0_i32 = arith.constant 0 : i32
    %c0_i32_0 = arith.constant 0 : i32
    return %arg0, %c0_i32 : i32, i32
  }
}

</mosaic_0001>

<bundles_post_ra>
// kernel: mlp_forward.1
= control target key start
LH: loop header
LB: loop body
LE: loop exit
PB: predicated region body
PF: predicated region fallthrough
CT: control target
= control target key end

     0   :  { %8 = vsyncpa [#allocation4], 0  ;;  %s496_s0 = inlined_call_operand.vmem [shape: bf16[16,128], index: 0, kind: input, shape index: {}]   ;;  %s497_s1 = inlined_call_operand.hbm [shape: bf16[128,128], index: 1, kind: input, shape index: {}]   ;;  %s498_s2 = inlined_call_operand.hbm [shape: bf16[128,128], index: 2, kind: input, shape index: {}]   ;;  %s499_s3 = inlined_call_operand.vmem [shape: f32[16,128], index: 3, kind: output, shape index: {}]  }
   0x1   :  { %9 = vsyncpa [#allocation6], 0  ;;  %s437_s12 = smov [#allocation3]   ;;  %s389_s16 = scalar_lea.hbm %s497_s1, 1024 }
   0x2   :  { %s17_s13 = sshll.u32 %s437_s12, 4  ;;  %p390_p0 = scmp.ne.s32.totalorder %s497_s1, %s389_s16  ;;  %s18_s13 = int_to_ptr.vmem [resolvable:$true] %s17_s13 }
   0x3   :  { %p393_p1 = scmp.lt.u32.totalorder %s389_s16, %s497_s1 }
   0x5   :  { %p395_p2 = pnand %p393_p1, %p390_p0 }
   0x7   :  { %398 = shalt.err (!%p395_p2)
}
   0x8   :  { %s399_s21 = scalar_lea.vmem %s18_s13, 1024  ;;  %p404_p4 = scmp.lt.s32.totalorder %s18_s13, %s18_s13 }
   0x9   :  { %p400_p3 = scmp.ne.s32.totalorder %s18_s13, %s399_s21  ;;  %p405_p5 = scmp.lt.s32.totalorder %s399_s21, %s399_s21 }
   0xb   :  { %p406_p6 = por %p405_p5, %p404_p4 }
   0xd   :  { %p407_p7 = pnand %p406_p6, %p400_p3 }
   0xf   :  { %410 = shalt.err (!%p407_p7)
}
  0x10   :  { %s438_s22 = smov 64   ;;  %s439_s23 = smov 4  }
  0x11   :  { %23 = dma.hbm_to_vmem [thread:$0]  %s497_s1, 1024, %s18_s13, [#allocation4], %s438_s22, %s438_s22, %s439_s23  }
  0x12   :  { %s440_s26 = smov [#allocation5]   ;;  %s411_s30 = scalar_lea.hbm %s498_s2, 1024 }
  0x13   :  { %s29_s27 = sshll.u32 %s440_s26, 4  ;;  %p412_p8 = scmp.ne.s32.totalorder %s498_s2, %s411_s30  ;;  %s30_s27 = int_to_ptr.vmem [resolvable:$true] %s29_s27 }
  0x14   :  { %p415_p9 = scmp.lt.u32.totalorder %s411_s30, %s498_s2 }
  0x16   :  { %p417_p10 = pnand %p415_p9, %p412_p8 }
  0x18   :  { %420 = shalt.err (!%p417_p10)
}
  0x19   :  { %s421_s8 = scalar_lea.vmem %s30_s27, 1024  ;;  %p426_p12 = scmp.lt.s32.totalorder %s30_s27, %s30_s27 }
  0x1a   :  { %p422_p11 = scmp.ne.s32.totalorder %s30_s27, %s421_s8  ;;  %p427_p13 = scmp.lt.s32.totalorder %s421_s8, %s421_s8 }
  0x1c   :  { %p428_p0 = por %p427_p13, %p426_p12 }
  0x1e   :  { %p429_p1 = pnand %p428_p0, %p422_p11 }
  0x20   :  { %432 = shalt.err (!%p429_p1)
}
  0x21   :  { %35 = dma.hbm_to_vmem [thread:$0]  %s498_s2, 1024, %s30_s27, [#allocation6], %s438_s22, %s438_s22, %s439_s23  }
  0x22   :  { %433 = dma.done.wait [#allocation4], 1024  }
  0x23   :  { %434 = vsyncadd [#allocation4], 4294966272 }
  0x24   :  { %435 = dma.done.wait [#allocation6], 1024  }
  0x25   :  { %436 = vsyncadd [#allocation6], 4294966272  ;;  %v441_v0 = vmov 0.0   ;;  %vm442_vm0 = vmmov 0   ;;  %v372_v1 = vld [vmem:[#allocation3] sm:$0xff]   ;;  %v373_v2 = vld [vmem:[#allocation3 + $0x8] sm:$0xff]  }
  0x26   :  { %326 = vmatprep.subr.bf16.mxu0 %v441_v0  ;;  %342 = vmatprep.mubr.msk.bf16.mxu0 %vm442_vm0, %v441_v0  ;;  %v374_v3 = vld [vmem:[#allocation3 + $0x10] sm:$0xff]   ;;  %v381_v4 = vld [vmem:[#allocation5] sm:$0xff]   ;;  %v375_v5 = vld [vmem:[#allocation3 + $0x18] sm:$0xff]  }
  0x27   :  { %346 = vmatprep.subr.bf16.mxu1 %v441_v0  ;;  %362 = vmatprep.mubr.msk.bf16.mxu1 %vm442_vm0, %v441_v0  ;;  %v382_v6 = vld [vmem:[#allocation5 + $0x8] sm:$0xff]   ;;  %v376_v7 = vld [vmem:[#allocation3 + $0x20] sm:$0xff]   ;;  %v383_v8 = vld [vmem:[#allocation5 + $0x10] sm:$0xff]  }
  0x28   :  { %327 = vmatpush3.bf16.msra.mxu0 %v372_v1  ;;  %347 = vmatpush3.bf16.msra.mxu1 %v381_v4  ;;  %v377_v9 = vld [vmem:[#allocation3 + $0x28] sm:$0xff]   ;;  %v384_v10 = vld [vmem:[#allocation5 + $0x18] sm:$0xff]   ;;  %v378_v11 = vld [vmem:[#allocation3 + $0x30] sm:$0xff]  }
  0x29   :  { %328 = vmatprep.subr.bf16.mxu0 %v441_v0  ;;  %348 = vmatprep.subr.bf16.mxu1 %v441_v0  ;;  %v385_v12 = vld [vmem:[#allocation5 + $0x20] sm:$0xff]   ;;  %v379_v13 = vld [vmem:[#allocation3 + $0x38] sm:$0xff]   ;;  %v386_v14 = vld [vmem:[#allocation5 + $0x28] sm:$0xff]  }
  0x2a   :  { %v380_v15 = vld [vmem:[%s496_s0] sm:$0xff]   ;;  %v387_v16 = vld [vmem:[#allocation5 + $0x30] sm:$0xff]   ;;  %v388_v17 = vld [vmem:[#allocation5 + $0x38] sm:$0xff]  }
  0x2c   :  { %329 = vmatpush3.bf16.msra.mxu0 %v373_v2  ;;  %349 = vmatpush3.bf16.msra.mxu1 %v382_v6 }
  0x2d   :  { %330 = vmatprep.subr.bf16.mxu0 %v441_v0  ;;  %350 = vmatprep.subr.bf16.mxu1 %v441_v0 }
  0x30   :  { %331 = vmatpush3.bf16.msra.mxu0 %v374_v3  ;;  %351 = vmatpush3.bf16.msra.mxu1 %v383_v8 }
  0x31   :  { %332 = vmatprep.subr.bf16.mxu0 %v441_v0  ;;  %352 = vmatprep.subr.bf16.mxu1 %v441_v0 }
  0x34   :  { %333 = vmatpush3.bf16.msra.mxu0 %v375_v5  ;;  %353 = vmatpush3.bf16.msra.mxu1 %v384_v10 }
  0x35   :  { %334 = vmatprep.subr.bf16.mxu0 %v441_v0  ;;  %354 = vmatprep.subr.bf16.mxu1 %v441_v0 }
  0x38   :  { %335 = vmatpush3.bf16.msra.mxu0 %v376_v7  ;;  %355 = vmatpush3.bf16.msra.mxu1 %v385_v12 }
  0x39   :  { %336 = vmatprep.subr.bf16.mxu0 %v441_v0  ;;  %356 = vmatprep.subr.bf16.mxu1 %v441_v0 }
  0x3c   :  { %337 = vmatpush3.bf16.msra.mxu0 %v377_v9  ;;  %357 = vmatpush3.bf16.msra.mxu1 %v386_v14 }
  0x3d   :  { %338 = vmatprep.subr.bf16.mxu0 %v441_v0  ;;  %358 = vmatprep.subr.bf16.mxu1 %v441_v0 }
  0x40   :  { %339 = vmatpush3.bf16.msra.mxu0 %v378_v11  ;;  %359 = vmatpush3.bf16.msra.mxu1 %v387_v16 }
  0x41   :  { %340 = vmatprep.subr.bf16.mxu0 %v441_v0  ;;  %360 = vmatprep.subr.bf16.mxu1 %v441_v0 }
  0x44   :  { %341 = vmatpush3.bf16.msra.mxu0 %v379_v13  ;;  %361 = vmatpush3.bf16.msra.mxu1 %v388_v17 }
  0x47   :  { %343 = vmatmul.mubr.bf16.vlgmr.msra.gmra.mrb[0].mxu0 %v380_v15 }
 0x11a   :  { %v155_v18 = vpop.f32.mrb[0].mxu0 }
 0x11b   :  { %v344_v19 = vpop.f32.mrb[1].mxu0  ;;  %v162_v21 = vmax.f32 %v155_v18, 0.0 }
 0x11c   :  { %v158_v20 = vpop.f32.mrb[2].mxu0 }
 0x11d   :  { %v163_v22 = vmax.f32 %v158_v20, 0.0  ;;  %v345_v23 = vpop.f32.mrb[3].mxu0 }
 0x11f   :  { %v166_v24 = vpack.c.bf16 %v163_v22, %v162_v21 }
 0x121   :  { %363 = vmatmul.mubr.bf16.vlgmr.msra.gmra.mrb[0].mxu1 %v166_v24 }
 0x1f4   :  { %v265_v25 = vpop.f32.mrb[0].mxu1 }
 0x1f5   :  { %v281_v26 = vmax.f32 %v265_v25, 0.0  ;;  %v364_v27 = vpop.f32.mrb[1].mxu1 }
 0x1f6   :  { %v268_v28 = vpop.f32.mrb[2].mxu1 }
 0x1f7   :  { %283 = vst [vmem:[%s499_s3] sm:$0xff] %v281_v26  ;;  %v282_v29 = vmax.f32 %v268_v28, 0.0  ;;  %v365_v30 = vpop.f32.mrb[3].mxu1 }
 0x1f9   :  { %284 = vst [vmem:[%s499_s3 + $0x8] sm:$0xff] %v282_v29 }
 0x1fa   :  { %289 = vsyncpa [#allocation4], 1 }
 0x1fb   :  { %290 = vsyncpa [#allocation6], 1 }

</bundles_post_ra>
